<compile_context>
chip_gen: v5e
topology: v5e:2x2
jax: 0.10.0
libtpu: 0.0.40
codegen_flags: <defaults>
</compile_context>

<pallas_src>
import jax
import jax.numpy as jnp
from jax.experimental import pallas as pl
from jax.experimental.pallas import tpu as pltpu


# ----------------------------------------------------------------------------
# Kernels
# ----------------------------------------------------------------------------
def _conv1x1_kernel_single_k(w_ref, x_ref, b_ref, o_ref):
    # Single contraction tile: write output directly, no scratch accumulator.
    o_ref[...] = (jnp.dot(w_ref[...], x_ref[...],
                          preferred_element_type=jnp.float32)
                  + b_ref[...]).astype(o_ref.dtype)


def _conv1x1_kernel_multi_k(w_ref, x_ref, b_ref, o_ref, acc_ref):
    k = pl.program_id(2)

    @pl.when(k == 0)
    def _():
        acc_ref[...] = jnp.zeros_like(acc_ref)

    # (Cout, tk) @ (tk, thw) on the MXU, f32 accumulation.
    acc_ref[...] += jnp.dot(w_ref[...], x_ref[...],
                            preferred_element_type=jnp.float32)

    @pl.when(k == pl.num_programs(2) - 1)
    def _():
        # bias (Cout, 1) broadcasts over the lane-dense spatial axis.
        o_ref[...] = (acc_ref[...] + b_ref[...]).astype(o_ref.dtype)


# ----------------------------------------------------------------------------
# Tile selection helpers (VMEM-budget / generation aware)
# ----------------------------------------------------------------------------
def _physical_vmem_bytes():
    try:
        return int(pltpu.get_tpu_info().vmem_capacity_bytes)
    except Exception:
        return 64 << 20  # conservative default (v7x has the smallest VMEM)


def _pick_k_tile(cin):
    """Contraction tile: 128-multiple dividing Cin, else full Cin."""
    for c in (512, 256, 128):
        if cin % c == 0:
            return c
    return cin


def _pick_spatial_tile(hw, tk, cout, in_itemsize, out_itemsize, batch, budget):
    """Largest 128-multiple lane tile that fits the per-step VMEM budget."""
    if hw <= 128:
        return hw                              # full (legal) lane dim
    cap = ((hw + 127) // 128) * 128            # no wider than the image
    thw = 128
    for c in (32768, 16384, 8192, 4096, 2048, 1024, 512, 256, 128):
        if c > cap:
            continue
        per_step = (2 * tk * c * in_itemsize       # double-buffered x block
                    + 2 * cout * c * out_itemsize  # double-buffered out block
                    + cout * c * 4)                # possible f32 accumulator
        if per_step <= budget:
            thw = c
            break
    # Keep >= 2 parallel grid steps so 2-TC (megacore) parts have work to split.
    if batch == 1:
        while thw > 128 and pl.cdiv(hw, thw) < 2:
            thw //= 2
    return thw


# ----------------------------------------------------------------------------
# Wrapper
# ----------------------------------------------------------------------------
def conv1x1_pallas(x_nchw, w_oihw, bias, *, compute_dtype=None):
    """Equivalent of OutConv.forward: y = Conv2d(k=1)(x) + bias, NCHW in/out.

    compute_dtype=jnp.bfloat16 halves HBM traffic (f32 accumulation kept);
    default None keeps the exact input dtype (matches PyTorch f32 reference).
    """
    B, Cin, H, W = x_nchw.shape
    Cout = w_oihw.shape[0]
    HW = H * W

    out_dtype = x_nchw.dtype
    x = x_nchw.reshape(B, Cin, HW)                      # contiguous, free
    if compute_dtype is not None:
        x = x.astype(compute_dtype)
    w = w_oihw.reshape(Cout, Cin).astype(x.dtype)       # (Cout, Cin), tiny
    b2 = bias.reshape(Cout, 1).astype(jnp.float32)      # broadcast over lanes

    in_itemsize = jnp.dtype(x.dtype).itemsize
    out_itemsize = jnp.dtype(out_dtype).itemsize

    phys_vmem = _physical_vmem_bytes()
    budget = min(phys_vmem // 2, 48 << 20)              # per-step block budget

    tk = _pick_k_tile(Cin)
    thw = _pick_spatial_tile(HW, tk, Cout, in_itemsize, out_itemsize, B, budget)

    n_j = pl.cdiv(HW, thw)       # ragged last spatial block is clipped
    n_k = Cin // tk              # exact by construction of tk
    grid = (B, n_j, n_k)

    single_k = (n_k == 1)
    kernel = _conv1x1_kernel_single_k if single_k else _conv1x1_kernel_multi_k
    scratch = [] if single_k else [pltpu.VMEM((Cout, thw), jnp.float32)]

    est_vmem = (2 * tk * thw * in_itemsize
                + 2 * Cout * thw * out_itemsize
                + 2 * Cout * tk * in_itemsize
                + 2 * Cout * 4
                + (0 if single_k else Cout * thw * 4))
    vmem_limit = int(min(phys_vmem - (8 << 20),
                         max(32 << 20, int(est_vmem * 1.5))))

    cost = pl.CostEstimate(
        flops=2 * B * HW * Cin * Cout,
        transcendentals=0,
        bytes_accessed=(B * Cin * HW + Cout * Cin) * in_itemsize
                       + B * Cout * HW * out_itemsize + Cout * 4)

    out = pl.pallas_call(
        kernel,
        out_shape=jax.ShapeDtypeStruct((B, Cout, HW), out_dtype),
        grid=grid,
        in_specs=[
            pl.BlockSpec((Cout, tk), lambda b, j, k: (0, k)),          # weights
            pl.BlockSpec((None, tk, thw), lambda b, j, k: (b, k, j)),  # x
            pl.BlockSpec((Cout, 1), lambda b, j, k: (0, 0)),           # bias
        ],
        out_specs=pl.BlockSpec((None, Cout, thw), lambda b, j, k: (b, 0, j)),
        scratch_shapes=scratch,
        compiler_params=pltpu.CompilerParams(
            dimension_semantics=("parallel", "parallel", "arbitrary"),
            vmem_limit_bytes=vmem_limit),
        cost_estimate=cost,
    )(w, x, b2)

    return out.reshape(B, Cout, H, W)


# ----------------------------------------------------------------------------
# Pure-JAX reference (matches the PyTorch module)
# ----------------------------------------------------------------------------
def conv1x1_ref(x, w, b):
    y = jax.lax.conv_general_dilated(
        x, w, (1, 1), [(0, 0), (0, 0)],
        dimension_numbers=("NCHW", "OIHW", "NCHW"))
    return y + b[None, :, None, None]


# ----------------------------------------------------------------------------
if __name__ == "__main__":
    key = jax.random.PRNGKey(0)

    def run_case(key, B, Cin, Cout, H, W):
        kx, kw, kb = jax.random.split(key, 3)
        x = jax.random.normal(kx, (B, Cin, H, W), dtype=jnp.float32)
        w = 0.1 * jax.random.normal(kw, (Cout, Cin, 1, 1), dtype=jnp.float32)
        b = 0.1 * jax.random.normal(kb, (Cout,), dtype=jnp.float32)
        out = jax.block_until_ready(jax.jit(conv1x1_pallas)(x, w, b))
        ref = jax.block_until_ready(conv1x1_ref(x, w, b))
        assert out.shape == (B, Cout, H, W), out.shape
        assert jnp.allclose(out, ref, atol=1e-5, rtol=1e-5), (
            float(jnp.max(jnp.abs(out - ref))))

    k1, k2, k3 = jax.random.split(key, 3)
    # Primary small case (single-K kernel, 128-divisible spatial axis).
    run_case(k1, B=2, Cin=4, Cout=8, H=16, W=16)
    # Non-128-divisible spatial axis -> ragged last block via cdiv grid.
    run_case(k2, B=1, Cin=3, Cout=5, H=18, W=18)
    # Large Cin -> multi-K accumulation path with f32 scratch.
    run_case(k3, B=1, Cin=1024, Cout=4, H=8, W=8)

    print("KERNEL_OK")
</pallas_src>

<mosaic_0001>
module attributes {stable_mosaic.version = 11 : i64} {
  func.func @_conv1x1_kernel_single_k(%arg0: i32, %arg1: i32, %arg2: i32, %arg3: memref<8x4xf32, #tpu.memory_space<vmem>>, %arg4: memref<1x4x256xf32, #tpu.memory_space<vmem>>, %arg5: memref<8x1xf32, #tpu.memory_space<vmem>>, %arg6: memref<1x8x256xf32, #tpu.memory_space<vmem>>) attributes {dimension_semantics = [#tpu.dimension_semantics<parallel>, #tpu.dimension_semantics<parallel>, #tpu.dimension_semantics<arbitrary>], iteration_bounds = array<i64: 2, 1, 1>, scalar_prefetch = 0 : i64, scratch_operands = 0 : i64, tpu.core_type = #tpu.core_type<tc>, window_params = [{transform_indices = @transform_0, window_bounds = array<i64: 8, 4>}, {transform_indices = @transform_1, window_bounds = array<i64: 1, 4, 256>}, {pipeline_mode = #tpu.pipeline_mode<synchronous>, transform_indices = @transform_2, window_bounds = array<i64: 8, 1>}, {transform_indices = @transform_3, window_bounds = array<i64: 1, 8, 256>}]} {
    %c0 = arith.constant 0 : index
    %c0_0 = arith.constant 0 : index
    %0 = vector.load %arg3[%c0, %c0_0] : memref<8x4xf32, #tpu.memory_space<vmem>>, vector<8x4xf32>
    %c0_1 = arith.constant 0 : index
    %c0_2 = arith.constant 0 : index
    %c0_3 = arith.constant 0 : index
    %1 = vector.load %arg4[%c0_1, %c0_2, %c0_3] : memref<1x4x256xf32, #tpu.memory_space<vmem>>, vector<1x4x256xf32>
    %2 = vector.shape_cast %1 : vector<1x4x256xf32> to vector<4x256xf32>
    %cst = arith.constant dense<0.000000e+00> : vector<8x256xf32>
    %3 = tpu.matmul %0, %2, %cst {dimension_numbers = #tpu.dot_dimension_numbers<[1], [0], [0], [1], [0, 0, 1, 1], [], []>} : vector<8x4xf32>, vector<4x256xf32>, vector<8x256xf32> -> vector<8x256xf32>
    %c0_4 = arith.constant 0 : index
    %c0_5 = arith.constant 0 : index
    %4 = vector.load %arg5[%c0_4, %c0_5] : memref<8x1xf32, #tpu.memory_space<vmem>>, vector<8x1xf32>
    %5 = vector.broadcast %4 : vector<8x1xf32> to vector<8x256xf32>
    %6 = arith.addf %3, %5 : vector<8x256xf32>
    %c0_6 = arith.constant 0 : index
    %c0_7 = arith.constant 0 : index
    %c0_8 = arith.constant 0 : index
    %7 = vector.load %arg6[%c0_6, %c0_7, %c0_8] : memref<1x8x256xf32, #tpu.memory_space<vmem>>, vector<1x8x256xf32>
    %8 = vector.shape_cast %7 : vector<1x8x256xf32> to vector<8x256xf32>
    %9 = vector.shape_cast %6 : vector<8x256xf32> to vector<1x8x256xf32>
    tpu.vector_store %arg6[%c0_6, %c0_7, %c0_8], %9 {strides = array<i32>} : memref<1x8x256xf32, #tpu.memory_space<vmem>>, vector<1x8x256xf32>,
    return
  }
  func.func @transform_0(%arg0: i32, %arg1: i32, %arg2: i32) -> (i32, i32) {
    %c0_i32 = arith.constant 0 : i32
    %c0_i32_0 = arith.constant 0 : i32
    return %c0_i32, %arg2 : i32, i32
  }
  func.func @transform_1(%arg0: i32, %arg1: i32, %arg2: i32) -> (i32, i32, i32) {
    %c0_i32 = arith.constant 0 : i32
    return %arg0, %arg2, %arg1 : i32, i32, i32
  }
  func.func @transform_2(%arg0: i32, %arg1: i32, %arg2: i32) -> (i32, i32) {
    %c0_i32 = arith.constant 0 : i32
    %c0_i32_0 = arith.constant 0 : i32
    %c0_i32_1 = arith.constant 0 : i32
    return %c0_i32, %c0_i32_0 : i32, i32
  }
  func.func @transform_3(%arg0: i32, %arg1: i32, %arg2: i32) -> (i32, i32, i32) {
    %c0_i32 = arith.constant 0 : i32
    %c0_i32_0 = arith.constant 0 : i32
    return %arg0, %c0_i32, %arg1 : i32, i32, i32
  }
}

</mosaic_0001>

<bundles_post_ra>
// kernel: conv1x1_pallas.1
= control target key start
LH: loop header
LB: loop body
LE: loop exit
PB: predicated region body
PF: predicated region fallthrough
CT: control target
= control target key end

     0   :  { %s511_s12 = smov 0   ;;  %s513_s13 = smov 0   ;;  %s550_s0 = inlined_call_operand.vmem [shape: f32[8,4], index: 0, kind: input, shape index: {}]   ;;  %s551_s1 = inlined_call_operand.vmem [shape: f32[2,4,256], index: 1, kind: input, shape index: {}]   ;;  %s552_s2 = inlined_call_operand.vmem [shape: f32[8,1], index: 2, kind: input, shape index: {}]   ;;  %s553_s3 = inlined_call_operand.vmem [shape: f32[2,8,256], index: 3, kind: output, shape index: {}]  }
   0x1   :  { %s515_s14 = smov 0  }
   0x2 LB: > { %s32_s15 = sadd.s32 1, %s484_s13  ;;  %p427_p0 = scmp.ge.s32.totalorder %s488_s14, 1  ;;  %s488_s14 = sphi %s515_s14, %s13_s14   ;;  %s484_s13 = sphi %s513_s13, %s555_s13   ;;  %s480_s12 = sphi %s511_s12, %s554_s12  }
   0x3   : > { %p34_p1 = scmp.ge.s32.totalorder %s32_s15, 2  ;;  %p180_p2 = scmp.lt.s32.totalorder %s488_s14, 3 }
   0x5   : > { %s557_s15 = smov (%p34_p1, %s32_s15), 0  ;;  %p181_p3 = pnand %p427_p0, %p180_p2 }
   0x6   : > { %p225_p4 = scmp.lt.s32.totalorder (!%p181_p3), %s480_s12, 1 }
   0x7   : > { %184 = sbr.rel (%p181_p3) target bundleno = 155 (0x9b), region = 32 }
   0xc   : > { %v250_v0 = vld [vmem:[%s552_s2] sm:$0xff]  ;;  %v490_v1 = vmov 0   ;;  %s559_s12 = smov (!%p225_p4, %s480_s12), 1  ;;  %vm264_vm0 = vcmask 1043456   ;;  %vm260_vm1 = vcmask 31744  }
   0xd   : > { %465 = vset.pattern.permute.xlu0 %v490_v1  ;;  %s438_s18 = sshll.u32 %s559_s12, 3  ;;  %v248_v3 = vld [vmem:[%s550_s0] sm:$0xff]  ;;  %s439_s24 = sshll.u32 %s559_s12, 4 }
   0xe   : > { %253 = vperm.xlu0 %465, %v250_v0   ;;  %s236_s21 = scalar_lea.vmem %s551_s1, %s438_s18  ;;  %s246_s27 = scalar_lea.vmem %s553_s3, %s439_s24 }
   0xf   : > { %v249_v2 = vld [vmem:[%s236_s21] sm:$0xff] }
  0x10   : > { %257 = vst [vmem:[#allocation1] ss:$2 sm:$0xff] %v249_v2 }
  0x17   : > { %v258_v4 = vld.sshfl [vmem:[#allocation1] sm:$0xff pattern:$0x75316420]  ;;  %v259_v5 = vld.sshfl [vmem:[#allocation1 + $0x8] sm:$0xff pattern:$0x75316420] }
  0x18   : > { %432 = vmatpush.msk.msra.mxu0 %vm264_vm0, %v258_v4  ;;  %434 = vmatpush.msk.msra.mxu1 %vm264_vm0, %v259_v5 }
  0x19   : > { %433 = vmatmul.msk.f32.vlgmr.msra.gmra.mxu0 %vm260_vm1, %v248_v3  ;;  %435 = vmatmul.msk.f32.vlgmr.msra.gmra.mxu1 %vm260_vm1, %v248_v3 }
  0x80   : > { %v254_v6 = vpop.permute.xlu0 %253 }
  0x96   : > { %v286_v7 = vpop.f32.mrf.mxu0  ;;  %v306_v8 = vpop.f32.mrf.mxu1 }
  0x97   : > { %v287_v9 = vadd.f32 %v286_v7, %v254_v6  ;;  %v307_v10 = vadd.f32 %v306_v8, %v254_v6 }
  0x99   : > { %309 = vst [vmem:[%s246_s27] sm:$0xff] %v287_v9 }
  0x9a   : > { %310 = vst [vmem:[%s246_s27 + $0x8] sm:$0xff] %v307_v10 }
  0x9b PF: > { %s13_s14 = sadd.s32 1, %s488_s14   ;;  %s554_s12 = smov %s484_s13 }
  0x9c   : > { %p10_p5 = scmp.ge.s32.totalorder %s13_s14, 4   ;;  %s555_s13 = smov %s557_s15 }
  0x9e   :  { %12 = sbr.rel (!%p10_p5) target bundleno = 2 (0x2), region = 65 }

</bundles_post_ra>
